<compile_context>
chip_gen: v6e
topology: v6e:2x2x1
jax: 0.10.0
libtpu: 0.0.40
codegen_flags: <defaults>
</compile_context>

<pallas_src>
import functools

import jax
import jax.numpy as jnp
from jax.experimental import pallas as pl
from jax.experimental.pallas import tpu as pltpu


def _round_up(n: int, m: int) -> int:
    return ((n + m - 1) // m) * m


def _gap_kernel(x_ref, w_in_ref, b_in_ref, w_out_ref, b_out_ref,
                ctx_ref, attn_ref, *, bt, s, s_in, d, h, s_pad, d_pad):
    # x block: (bt, s_in, d). Flatten batch*seq so the MXU sees M = bt*s_in rows.
    x3 = x_ref[...]                                     # (bt, s_in, d)
    x2 = x3.reshape(bt * s_in, d)                       # layout no-op (s_in % 8 == 0)

    # linear_in + relu  (MXU matmul, f32 accumulate)
    hidden = jnp.dot(x2, w_in_ref[...], preferred_element_type=jnp.float32)
    hidden = jnp.maximum(hidden + b_in_ref[...].astype(jnp.float32), 0.0)  # (bt*s_in, h)

    # linear_out (h -> 1): per-element multiply + lane reduction.
    b_out = b_out_ref[0, 0]                             # scalar read from SMEM
    hidden3 = hidden.reshape(bt, s_in, h)               # layout no-op
    w_out = w_out_ref[...].astype(jnp.float32)          # (1, h), broadcasts
    scores = jnp.sum(hidden3 * w_out, axis=-1) + b_out  # (bt, s_in)

    # Mask padded sequence positions (only present when S % 8 != 0).
    if s_in > s:
        col = jax.lax.broadcasted_iota(jnp.int32, (bt, s_in), 1)
        scores = jnp.where(col < s, scores, -jnp.inf)

    # softmax over the sequence axis (per batch row; rows are independent so
    # garbage rows in a ragged final batch block cannot contaminate real rows).
    m = jnp.max(scores, axis=-1, keepdims=True)
    e = jnp.exp(scores - m)
    denom = jnp.sum(e, axis=-1, keepdims=True)
    attn = e * pl.reciprocal(denom, approx=False)       # (bt, s_in), f32

    # context vector: VPU weighted sum (f32 accumulate), MXU stays free.
    ctx = jnp.sum(attn[:, :, None] * x3.astype(jnp.float32), axis=1)   # (bt, d)

    # Lane-dense stores: pad last dims up to a multiple of 128; the wrapper
    # slices the padding back off.
    attn_out = attn.astype(attn_ref.dtype)
    if s_pad > s_in:
        attn_out = jnp.concatenate(
            [attn_out, jnp.zeros((bt, s_pad - s_in), attn_ref.dtype)], axis=-1)
    ctx_out = ctx.astype(ctx_ref.dtype)
    if d_pad > d:
        ctx_out = jnp.concatenate(
            [ctx_out, jnp.zeros((bt, d_pad - d), ctx_ref.dtype)], axis=-1)

    attn_ref[...] = attn_out
    ctx_ref[...] = ctx_out


def global_attention_pooling(x, w_in, b_in, w_out, b_out, *,
                             batch_tile=None, vmem_limit_bytes=None):
    """x: (B, S, D). w_in: (D, H) (= linear_in.weight^T), b_in: (H,),
    w_out: (H,) (= linear_out.weight squeezed), b_out: scalar.
    Returns (context (B, D), attention_weights (B, S))."""
    B, S, D = x.shape
    H = w_in.shape[1]
    itemsize = jnp.dtype(x.dtype).itemsize

    # --- pad H to a lane-dense multiple of 128 (weights only; cheap & exact:
    # zero weight columns -> relu(0)=0 hidden -> zero w_out contribution).
    H_pad = _round_up(H, 128)
    if H_pad > H:
        w_in = jnp.pad(w_in, ((0, 0), (0, H_pad - H)))
        b_in = jnp.pad(b_in, (0, H_pad - H))
        w_out = jnp.pad(w_out, (0, H_pad - H))
    # D is left ragged on purpose: padding it to 128 would force an HBM
    # re-copy of x (the largest tensor). Produce x lane-dense upstream instead.

    # --- pad S to a sublane multiple of 8 only when ragged, so in-kernel
    # reshapes are layout no-ops; padded positions are masked in the kernel.
    S_in = _round_up(S, 8)
    xp = x
    if S_in > S:
        xp = jnp.pad(x, ((0, 0), (0, S_in - S), (0, 0)))

    S_pad = _round_up(S_in, 128)   # lane-dense output widths
    D_pad = _round_up(D, 128)

    # --- generation-aware VMEM budget (v7x: 64 MiB/TC, v5e/v6e: 128 MiB).
    try:
        info = pltpu.get_tpu_info()
        vmem_cap = int(getattr(info, "vmem_capacity_bytes", 64 * 1024 * 1024))
    except Exception:
        vmem_cap = 64 * 1024 * 1024        # conservative fallback (= v7x per TC)
    if vmem_limit_bytes is None:
        vmem_limit_bytes = min(vmem_cap - 16 * 1024 * 1024, 100 * 1024 * 1024)
        vmem_limit_bytes = max(vmem_limit_bytes, 32 * 1024 * 1024)
    vmem_limit_bytes = int(vmem_limit_bytes)
    budget = max(vmem_limit_bytes - 8 * 1024 * 1024, 8 * 1024 * 1024)

    # --- bt sized from the full resident working set.
    per_b = (2 * S_in * D * itemsize                    # double-buffered x block
             + S_in * H_pad * 4                         # f32 hidden
             + S_in * D * 4                             # f32 context product
             + 2 * (D_pad + S_pad) * itemsize)          # double-buffered outputs
    per_b = max(per_b, 1)
    fixed = 2 * (D * H_pad + 2 * H_pad) * itemsize + (1 << 20)   # weights + slack
    if batch_tile is None:
        bt = max(1, (budget - fixed) // per_b)
        bt = min(bt, 1024)
    else:
        bt = int(batch_tile)

    if bt >= B:
        bt = B                                          # single (full-dim) block
    else:
        bt = max(8, (bt // 8) * 8)                      # round DOWN to sublanes
        if B >= 16:
            # v7x megacore: ensure >= 2 grid steps so both TensorCores get work.
            bt = min(bt, _round_up(-(-B // 2), 8))
        bt = min(bt, _round_up(B, 8))

    grid = pl.cdiv(B, bt)

    b_in_2d = b_in.reshape(1, H_pad)
    w_out_2d = w_out.reshape(1, H_pad)
    b_out_2d = jnp.asarray(b_out, jnp.float32).reshape(1, 1)

    kernel = functools.partial(_gap_kernel, bt=bt, s=S, s_in=S_in, d=D,
                               h=H_pad, s_pad=S_pad, d_pad=D_pad)

    grid_spec = pltpu.PrefetchScalarGridSpec(
        num_scalar_prefetch=0,
        grid=(grid,),
        in_specs=[
            pl.BlockSpec((bt, S_in, D), lambda i: (i, 0, 0)),     # x tile
            pl.BlockSpec((D, H_pad),    lambda i: (0, 0)),        # W_in^T (const)
            pl.BlockSpec((1, H_pad),    lambda i: (0, 0)),        # b_in   (const)
            pl.BlockSpec((1, H_pad),    lambda i: (0, 0)),        # w_out  (const)
            pl.BlockSpec(memory_space=pltpu.MemorySpace.SMEM),    # b_out scalar
        ],
        out_specs=[
            pl.BlockSpec((bt, D_pad), lambda i: (i, 0)),          # context (lane-dense)
            pl.BlockSpec((bt, S_pad), lambda i: (i, 0)),          # attention (lane-dense)
        ],
    )

    ctx_pad, attn_pad = pl.pallas_call(
        kernel,
        out_shape=(
            jax.ShapeDtypeStruct((B, D_pad), x.dtype),
            jax.ShapeDtypeStruct((B, S_pad), x.dtype),
        ),
        grid_spec=grid_spec,
        compiler_params=pltpu.CompilerParams(
            dimension_semantics=("parallel",),
            vmem_limit_bytes=vmem_limit_bytes),
    )(xp, w_in, b_in_2d, w_out_2d, b_out_2d)

    return ctx_pad[:, :D], attn_pad[:, :S]


def _reference(x, w_in, b_in, w_out, b_out):
    hidden = jax.nn.relu(jnp.einsum("bsd,dh->bsh", x, w_in) + b_in)
    scores = jnp.einsum("bsh,h->bs", hidden, w_out) + b_out
    attn = jax.nn.softmax(scores, axis=1)
    ctx = jnp.einsum("bs,bsd->bd", attn, x)
    return ctx, attn


if __name__ == "__main__":
    B, S, D, H = 2, 8, 32, 32   # batch, seq, input_size, hidden_size

    key = jax.random.PRNGKey(0)
    kx, k1, k2, k3, k4 = jax.random.split(key, 5)

    x = jax.random.normal(kx, (B, S, D), dtype=jnp.float32)

    # Deterministic parameter init mimicking nn.Linear (uniform +-1/sqrt(fan_in)).
    lim_in = 1.0 / jnp.sqrt(jnp.float32(D))
    lim_out = 1.0 / jnp.sqrt(jnp.float32(H))
    w_in = jax.random.uniform(k1, (D, H), jnp.float32, -lim_in, lim_in)    # linear_in.weight^T
    b_in = jax.random.uniform(k2, (H,),   jnp.float32, -lim_in, lim_in)
    w_out = jax.random.uniform(k3, (H,),  jnp.float32, -lim_out, lim_out)  # linear_out.weight (1,H) squeezed
    b_out = jax.random.uniform(k4, (),    jnp.float32, -lim_out, lim_out)

    ctx, attn = global_attention_pooling(x, w_in, b_in, w_out, b_out)
    jax.block_until_ready((ctx, attn))

    ctx_ref, attn_ref = _reference(x, w_in, b_in, w_out, b_out)
    assert jnp.allclose(ctx, ctx_ref, atol=1e-5, rtol=1e-5)
    assert jnp.allclose(attn, attn_ref, atol=1e-5, rtol=1e-5)

    print("KERNEL_OK")
</pallas_src>

<mosaic_0001>
module attributes {stable_mosaic.version = 11 : i64} {
  func.func @_gap_kernel(%arg0: i32, %arg1: memref<2x8x32xf32, #tpu.memory_space<vmem>>, %arg2: memref<32x128xf32, #tpu.memory_space<vmem>>, %arg3: memref<1x128xf32, #tpu.memory_space<vmem>>, %arg4: memref<1x128xf32, #tpu.memory_space<vmem>>, %arg5: memref<1x1xf32, #tpu.memory_space<smem>>, %arg6: memref<2x128xf32, #tpu.memory_space<vmem>>, %arg7: memref<2x128xf32, #tpu.memory_space<vmem>>) attributes {dimension_semantics = [#tpu.dimension_semantics<parallel>], iteration_bounds = array<i64: 1>, scalar_prefetch = 0 : i64, scratch_operands = 0 : i64, tpu.core_type = #tpu.core_type<tc>, window_params = [{transform_indices = @transform_0, window_bounds = array<i64: 2, 8, 32>}, {pipeline_mode = #tpu.pipeline_mode<synchronous>, transform_indices = @transform_1, window_bounds = array<i64: 32, 128>}, {pipeline_mode = #tpu.pipeline_mode<synchronous>, transform_indices = @transform_2, window_bounds = array<i64: 1, 128>}, {pipeline_mode = #tpu.pipeline_mode<synchronous>, transform_indices = @transform_3, window_bounds = array<i64: 1, 128>}, {transform_indices = @transform_4, window_bounds = array<i64: 1, 1>}, {transform_indices = @transform_5, window_bounds = array<i64: 2, 128>}, {transform_indices = @transform_6, window_bounds = array<i64: 2, 128>}]} {
    %c0 = arith.constant 0 : index
    %c0_0 = arith.constant 0 : index
    %c0_1 = arith.constant 0 : index
    %0 = vector.load %arg1[%c0, %c0_0, %c0_1] : memref<2x8x32xf32, #tpu.memory_space<vmem>>, vector<2x8x32xf32>
    %1 = vector.shape_cast %0 : vector<2x8x32xf32> to vector<16x32xf32>
    %c0_2 = arith.constant 0 : index
    %c0_3 = arith.constant 0 : index
    %2 = vector.load %arg2[%c0_2, %c0_3] : memref<32x128xf32, #tpu.memory_space<vmem>>, vector<32x128xf32>
    %cst = arith.constant dense<0.000000e+00> : vector<16x128xf32>
    %3 = tpu.matmul %1, %2, %cst {dimension_numbers = #tpu.dot_dimension_numbers<[1], [0], [0], [1], [0, 0, 1, 1], [], []>} : vector<16x32xf32>, vector<32x128xf32>, vector<16x128xf32> -> vector<16x128xf32>
    %c0_4 = arith.constant 0 : index
    %c0_5 = arith.constant 0 : index
    %4 = vector.load %arg3[%c0_4, %c0_5] : memref<1x128xf32, #tpu.memory_space<vmem>>, vector<1x128xf32>
    %5 = vector.broadcast %4 : vector<1x128xf32> to vector<16x128xf32>
    %6 = arith.addf %3, %5 : vector<16x128xf32>
    %cst_6 = arith.constant 0.000000e+00 : f32
    %7 = vector.broadcast %cst_6 : f32 to vector<16x128xf32>
    %8 = arith.maximumf %6, %7 : vector<16x128xf32>
    %c0_7 = arith.constant 0 : index
    %c0_8 = arith.constant 0 : index
    %9 = memref.load %arg5[%c0_7, %c0_8] : memref<1x1xf32, #tpu.memory_space<smem>>
    %10 = vector.shape_cast %8 : vector<16x128xf32> to vector<2x8x128xf32>
    %c0_9 = arith.constant 0 : index
    %c0_10 = arith.constant 0 : index
    %11 = vector.load %arg4[%c0_9, %c0_10] : memref<1x128xf32, #tpu.memory_space<vmem>>, vector<1x128xf32>
    %12 = vector.shape_cast %11 : vector<1x128xf32> to vector<1x1x128xf32>
    %13 = vector.broadcast %12 : vector<1x1x128xf32> to vector<2x8x128xf32>
    %14 = arith.mulf %10, %13 : vector<2x8x128xf32>
    %cst_11 = arith.constant dense<0.000000e+00> : vector<2x8xf32>
    %15 = vector.multi_reduction <add>, %14, %cst_11 [2] : vector<2x8x128xf32> to vector<2x8xf32>
    %16 = vector.broadcast %9 : f32 to vector<2x8xf32>
    %17 = arith.addf %15, %16 : vector<2x8xf32>
    %cst_12 = arith.constant dense<0xFF800000> : vector<2xf32>
    %18 = vector.multi_reduction <maximumf>, %17, %cst_12 [1] : vector<2x8xf32> to vector<2xf32>
    %19 = vector.shape_cast %18 : vector<2xf32> to vector<2x1xf32>
    %20 = vector.broadcast %19 : vector<2x1xf32> to vector<2x8xf32>
    %21 = arith.subf %17, %20 : vector<2x8xf32>
    %22 = math.exp %21 : vector<2x8xf32>
    %cst_13 = arith.constant dense<0.000000e+00> : vector<2xf32>
    %23 = vector.multi_reduction <add>, %22, %cst_13 [1] : vector<2x8xf32> to vector<2xf32>
    %24 = vector.shape_cast %23 : vector<2xf32> to vector<2x1xf32>
    %25 = tpu.reciprocal %24 : vector<2x1xf32> -> vector<2x1xf32>
    %26 = vector.broadcast %25 : vector<2x1xf32> to vector<2x8xf32>
    %27 = arith.mulf %22, %26 : vector<2x8xf32>
    %28 = vector.shape_cast %27 : vector<2x8xf32> to vector<2x8x1xf32>
    %29 = vector.broadcast %28 : vector<2x8x1xf32> to vector<2x8x32xf32>
    %30 = arith.mulf %29, %0 : vector<2x8x32xf32>
    %cst_14 = arith.constant dense<0.000000e+00> : vector<2x32xf32>
    %31 = vector.multi_reduction <add>, %30, %cst_14 [1] : vector<2x8x32xf32> to vector<2x32xf32>
    %cst_15 = arith.constant 0.000000e+00 : f32
    %32 = vector.broadcast %cst_15 : f32 to vector<2x120xf32>
    %33 = tpu.concatenate %27, %32 in 1 : vector<2x8xf32>, vector<2x120xf32> -> vector<2x128xf32>
    %cst_16 = arith.constant 0.000000e+00 : f32
    %34 = vector.broadcast %cst_16 : f32 to vector<2x96xf32>
    %35 = tpu.concatenate %31, %34 in 1 : vector<2x32xf32>, vector<2x96xf32> -> vector<2x128xf32>
    %c0_17 = arith.constant 0 : index
    %c0_18 = arith.constant 0 : index
    %36 = vector.load %arg7[%c0_17, %c0_18] : memref<2x128xf32, #tpu.memory_space<vmem>>, vector<2x128xf32>
    tpu.vector_store %arg7[%c0_17, %c0_18], %33 {strides = array<i32>} : memref<2x128xf32, #tpu.memory_space<vmem>>, vector<2x128xf32>,
    %c0_19 = arith.constant 0 : index
    %c0_20 = arith.constant 0 : index
    %37 = vector.load %arg6[%c0_19, %c0_20] : memref<2x128xf32, #tpu.memory_space<vmem>>, vector<2x128xf32>
    tpu.vector_store %arg6[%c0_19, %c0_20], %35 {strides = array<i32>} : memref<2x128xf32, #tpu.memory_space<vmem>>, vector<2x128xf32>,
    return
  }
  func.func @transform_0(%arg0: i32) -> (i32, i32, i32) {
    %c0_i32 = arith.constant 0 : i32
    %c0_i32_0 = arith.constant 0 : i32
    %c0_i32_1 = arith.constant 0 : i32
    return %arg0, %c0_i32, %c0_i32_0 : i32, i32, i32
  }
  func.func @transform_1(%arg0: i32) -> (i32, i32) {
    %c0_i32 = arith.constant 0 : i32
    %c0_i32_0 = arith.constant 0 : i32
    %c0_i32_1 = arith.constant 0 : i32
    return %c0_i32, %c0_i32_0 : i32, i32
  }
  func.func @transform_2(%arg0: i32) -> (i32, i32) {
    %c0_i32 = arith.constant 0 : i32
    %c0_i32_0 = arith.constant 0 : i32
    %c0_i32_1 = arith.constant 0 : i32
    return %c0_i32, %c0_i32_0 : i32, i32
  }
  func.func @transform_3(%arg0: i32) -> (i32, i32) {
    %c0_i32 = arith.constant 0 : i32
    %c0_i32_0 = arith.constant 0 : i32
    %c0_i32_1 = arith.constant 0 : i32
    return %c0_i32, %c0_i32_0 : i32, i32
  }
  func.func @transform_4(%arg0: i32) -> (i32, i32) {
    %c0_i32 = arith.constant 0 : i32
    %c0_i32_0 = arith.constant 0 : i32
    %c0_i32_1 = arith.constant 0 : i32
    return %c0_i32, %c0_i32_0 : i32, i32
  }
  func.func @transform_5(%arg0: i32) -> (i32, i32) {
    %c0_i32 = arith.constant 0 : i32
    %c0_i32_0 = arith.constant 0 : i32
    return %arg0, %c0_i32 : i32, i32
  }
  func.func @transform_6(%arg0: i32) -> (i32, i32) {
    %c0_i32 = arith.constant 0 : i32
    %c0_i32_0 = arith.constant 0 : i32
    return %arg0, %c0_i32 : i32, i32
  }
}

</mosaic_0001>

<bundles_post_ra>
// kernel: tpu_custom_call.1
= control target key start
LH: loop header
LB: loop body
LE: loop exit
PB: predicated region body
PF: predicated region fallthrough
CT: control target
= control target key end

     0   :  { %13 = vsyncpa [#allocation4], 0  ;;  %s519_s0 = inlined_call_operand.hbm [shape: f32[2,8,32], index: 0, kind: input, shape index: {}]   ;;  %s520_s1 = inlined_call_operand.hbm [shape: f32[32,128], index: 1, kind: input, shape index: {}]   ;;  %s521_s2 = inlined_call_operand.vmem [shape: f32[1,128], index: 2, kind: input, shape index: {}]   ;;  %s522_s3 = inlined_call_operand.vmem [shape: f32[1,128], index: 3, kind: input, shape index: {}]   ;;  %s523_s4 = inlined_call_operand.<no memory space> [shape: f32[1,1], index: 4, kind: input, shape index: {}]   ;;  %s524_s5 = inlined_call_operand.hbm [shape: f32[2,128], index: 5, kind: output, shape index: {0}]   ;;  %s525_s6 = inlined_call_operand.hbm [shape: f32[2,128], index: 6, kind: output, shape index: {1}]  }
   0x1   :  { %14 = vsyncpa [#allocation7], 0 }
   0x2   :  { %15 = vsyncpa [#allocation5], 0 }
   0x3   :  { %16 = vsyncpa [#allocation10], 0  ;;  %s437_s21 = smov [#allocation3]  }
   0x4   :  { %s22_s22 = sshll.u32 %s437_s21, 4  ;;  %s23_s22 = int_to_ptr.vmem [resolvable:$true] %s22_s22 }
   0x5   :  { %s357_s23 = scalar_lea.vmem %s23_s22, 256  ;;  %p362_p1 = scmp.lt.s32.totalorder %s23_s22, %s23_s22 }
   0x6   :  { %p358_p0 = scmp.ne.s32.totalorder %s23_s22, %s357_s23  ;;  %p363_p2 = scmp.lt.s32.totalorder %s357_s23, %s357_s23 }
   0x8   :  { %p364_p3 = por %p363_p2, %p362_p1 }
   0xa   :  { %p365_p4 = pnand %p364_p3, %p358_p0 }
   0xc   :  { %368 = shalt.err (!%p365_p4)
}
   0xd   :  { %s438_s24 = smov 128   ;;  %s439_s25 = smov 8  }
   0xe   :  { %28 = dma.hbm_to_vmem [thread:$0]  %s519_s0, 256, %s23_s22, [#allocation4], %s438_s24, %s438_s24, %s439_s25  }
   0xf   :  { %s440_s28 = smov [#allocation6]  }
  0x10   :  { %s34_s29 = sshll.u32 %s440_s28, 4  ;;  %s35_s29 = int_to_ptr.vmem [resolvable:$true] %s34_s29 }
  0x11   :  { %s377_s30 = scalar_lea.vmem %s35_s29, 512  ;;  %p382_p6 = scmp.lt.s32.totalorder %s35_s29, %s35_s29 }
  0x12   :  { %p378_p5 = scmp.ne.s32.totalorder %s35_s29, %s377_s30  ;;  %p383_p7 = scmp.lt.s32.totalorder %s377_s30, %s377_s30 }
  0x14   :  { %p384_p8 = por %p383_p7, %p382_p6 }
  0x16   :  { %p385_p9 = pnand %p384_p8, %p378_p5 }
  0x18   :  { %388 = shalt.err (!%p385_p9)
}
  0x19   :  { %40 = dma.hbm_to_vmem [thread:$0]  %s520_s1, 512, %s35_s29, [#allocation7], %s438_s24, %s438_s24, %s439_s25  }
  0x1a   :  { %429 = dma.done.wait [#allocation4], 256  }
  0x1b   :  { %430 = vsyncadd [#allocation4], 4294967040 }
  0x1c   :  { %431 = dma.done.wait [#allocation7], 512  }
  0x1d   :  { %432 = vsyncadd [#allocation7], 4294966784  ;;  %vm66_vm0 = vcmask 261120   ;;  %v58_v0 = vld [vmem:[#allocation6 + $0x18] sm:$0xff]  ;;  %v57_v1 = vld [vmem:[#allocation6 + $0x10] sm:$0xff]  ;;  %v169_v16 = vlaneseq  ;;  %v164_v19 = vstv %s523_s4  ;;  %vm179_vm1 = vcmask 1041409  }
  0x1e   :  { %323 = vmatprep.subr.mxu0 %v58_v0  ;;  %v485_v2 = vld [vmem:[#allocation3] sm:$0xff]  ;;  %v56_v3 = vld [vmem:[#allocation6 + $0x8] sm:$0xff]  ;;  %v55_v4 = vld [vmem:[#allocation6] sm:$0xff]  ;;  %vm182_vm2 = vcmask 58368   ;;  %v441_v29 = vmov 0   ;;  %vm274_vm3 = vcmask 64512  }
  0x1f   :  { %324 = vmatpush3.msra.mxu0 %v58_v0  ;;  %331 = vmatprep.mubr.msk.f32.mxu0 %vm66_vm0, %v485_v2  ;;  %v489_v5 = vld [vmem:[#allocation3 + $0x8] sm:$0xff]  ;;  %v313_v7 = vld [vmem:[%s521_s2] ss:$0 sm:$0xff]  ;;  %v170_v17 = vand.u32 127, %v169_v16  ;;  %v172_v18 = vshrl.u32 %v169_v16, 7  ;;  %s442_s2 = smov [#allocation9]  }
  0x20   :  { %325 = vmatprep.subr.mxu0 %v57_v1  ;;  %v316_v12 = vld [vmem:[%s522_s3] ss:$0 sm:$0xff]  ;;  %342 = vset.pattern.permute.xlu0 %v441_v29  ;;  %s299_s3 = sshll.u32 %s442_s2, 4  ;;  %s300_s3 = int_to_ptr.vmem [resolvable:$true] %s299_s3 }
  0x21   :  { %326 = vmatpush3.msra.mxu0 %v57_v1  ;;  %v173_v21 = vsub.s32 %v170_v17, %v172_v18  ;;  %341 = vset.pattern.permute.xlu1 %v441_v29  ;;  %v189_v30 = vsub.s32 0, %v172_v18  ;;  %v193_v31 = vsub.s32 1, %v172_v18  ;;  %s389_s4 = scalar_lea.vmem %s300_s3, 32  ;;  %p394_p11 = scmp.lt.s32.totalorder %s300_s3, %s300_s3 }
  0x22   :  { %327 = vmatprep.subr.mxu0 %v56_v3  ;;  %p390_p10 = scmp.ne.s32.totalorder %s300_s3, %s389_s4  ;;  %p395_p12 = scmp.lt.s32.totalorder %s389_s4, %s389_s4 }
  0x23   :  { %328 = vmatpush3.msra.mxu0 %v56_v3 }
  0x24   :  { %329 = vmatprep.subr.mxu0 %v55_v4  ;;  %p396_p13 = por %p395_p12, %p394_p11 }
  0x25   :  { %330 = vmatpush3.msra.mxu0 %v55_v4 }
  0x26   :  { %332 = vmatmul.mubr.msk.f32.vlgmr.msra.gmra.mxu0 %vm66_vm0, %v489_v5  ;;  %p397_p0 = pnand %p396_p13, %p390_p10 }
  0xe6   :  { %v333_v6 = vpop.f32.mrf.mxu0 }
  0xe7   :  { %v145_v9 = vadd.f32 %v333_v6, %v313_v7 }
  0xe8   :  { %v139_v8 = vpop.f32.mrf.mxu0 }
  0xe9   :  { %v140_v10 = vadd.f32 %v313_v7, %v139_v8  ;;  %v149_v13 = vmax.f32 %v145_v9, 0.0 }
  0xeb   :  { %v148_v11 = vmax.f32 %v140_v10, 0.0  ;;  %v159_v15 = vmul.f32 %v316_v12, %v149_v13 }
  0xed   :  { %v158_v14 = vmul.f32 %v316_v12, %v148_v11 }
  0xef   :  { %160 = vadd.xlane.f32.xlu0 %v158_v14 }
  0xf3   :  { %162 = vadd.xlane.f32.xlu0 %v159_v15 }
 0x178   :  { %v161_v20 = vpop.xlane.xlu0 %160 }
 0x179   :  { %v165_v22 = vadd.f32 %v164_v19, %v161_v20 }
 0x17b   :  { %v174_v25 = vrot.slane %v165_v22, %v173_v21 }
 0x17c   :  { %v163_v23 = vpop.xlane.xlu0 %162 }
 0x17d   :  { %v166_v24 = vadd.f32 %v164_v19, %v163_v23 }
 0x17f   :  { %v178_v26 = vrot.slane %v166_v24, %v173_v21 }
 0x181   :  { %v180_v27 = vsel %vm179_vm1, %v178_v26, %v174_v25 }
 0x182   :  { %v183_v28 = vsel %vm182_vm2, %v180_v27, -inf }
 0x183   :  { %184 = vmax.xlane.f32.xlu1 %v183_v28 }
 0x20c   :  { %v185_v32 = vpop.xlane.xlu1 %184 }
 0x20d   :  { %v190_v33 = vrot.slane %v185_v32, %v189_v30  ;;  %v194_v34 = vrot.slane %v185_v32, %v193_v31 }
 0x20f   :  { %v197_v35 = vsub.f32 %v165_v22, %v190_v33  ;;  %v198_v36 = vsub.f32 %v166_v24, %v194_v34 }
 0x211   :  { %v199_v37 = vmul.f32 1.442695, %v197_v35  ;;  %v201_v38 = vmul.f32 1.442695, %v198_v36 }
 0x213   :  { %343 = vpow2.f32 %v199_v37 }
 0x214   :  { %345 = vpow2.f32 %v201_v38 }
 0x220   :  { %v344_v39 = vpop.eup %343 }
 0x221   :  { %v346_v40 = vpop.eup %345  ;;  %206 = vperm.xlu1 %341, %v344_v39  }
 0x222   :  { %209 = vperm.xlu0 %342, %v346_v40  }
 0x29c   :  { %v207_v41 = vpop.permute.xlu1 %206 }
 0x29d   :  { %v210_v42 = vpop.permute.xlu0 %209  ;;  %v214_v43 = vrot.slane %v207_v41, %v173_v21 }
 0x29e   :  { %v218_v44 = vrot.slane %v210_v42, %v173_v21 }
 0x2a0   :  { %v219_v45 = vsel %vm179_vm1, %v218_v44, %v214_v43 }
 0x2a1   :  { %v221_v46 = vsel %vm182_vm2, %v219_v45, 0.0 }
 0x2a2   :  { %222 = vadd.xlane.f32.xlu1 %v221_v46 }
 0x32b   :  { %v223_v47 = vpop.xlane.xlu1 %222 }
 0x32c   :  { %347 = vrcp.f32 %v223_v47 }
 0x339   :  { %v348_v48 = vpop.eup %347 }
 0x33a   :  { %v229_v49 = vrot.slane %v348_v48, %v189_v30  ;;  %v233_v51 = vrot.slane %v348_v48, %v193_v31 }
 0x33c   :  { %v236_v50 = vmul.f32 %v344_v39, %v229_v49  ;;  %v237_v52 = vmul.f32 %v346_v40, %v233_v51 }
 0x33e   :  { %240 = vperm.xlu0 %342, %v236_v50  }
 0x342   :  { %245 = vperm.xlu0 %342, %v237_v52  }
 0x3b9   :  { %v241_v53 = vpop.permute.xlu0 %240 }
 0x3ba   :  { %v248_v54 = vmul.f32 %v241_v53, %v485_v2  ;;  %v267_v58 = vrot.slane %v241_v53, %v173_v21 }
 0x3bc   :  { %v250_v55 = vsel %vm66_vm0, %v248_v54, 0.0 }
 0x3bd   :  { %v251_v56 = vrot.slane %v250_v55, 4  ;;  %v246_v57 = vpop.permute.xlu0 %245 }
 0x3be   :  { %v249_v59 = vmul.f32 %v246_v57, %v489_v5  ;;  %v271_v60 = vrot.slane %v246_v57, %v173_v21 }
 0x3bf   :  { %v252_v61 = vadd.f32 %v251_v56, %v250_v55 }
 0x3c0   :  { %v257_v62 = vsel %vm66_vm0, %v249_v59, 0.0  ;;  %v272_v63 = vsel %vm179_vm1, %v271_v60, %v267_v58 }
 0x3c1   :  { %v253_v0 = vrot.slane %v252_v61, 2  ;;  %v258_v1 = vrot.slane %v257_v62, 4  ;;  %v275_v2 = vsel %vm274_vm3, %v272_v63, 0.0 }
 0x3c2   :  { %281 = vst [vmem:[#allocation9] sm:$0x3] %v275_v2 }
 0x3c3   :  { %v254_v3 = vadd.f32 %v253_v0, %v252_v61  ;;  %v259_v4 = vadd.f32 %v258_v1, %v257_v62 }
 0x3c4   :  { %400 = shalt.err (!%p397_p0)
}
 0x3c5   :  { %302 = dma.vmem_to_hbm [thread:$0]  %s300_s3, 32, %s525_s6, [#allocation10]   ;;  %v260_v5 = vrot.slane %v259_v4, 2  ;;  %v255_v6 = vrot.slane %v254_v3, 1 }
 0x3c6   :  { %s443_s15 = smov [#allocation8]  }
 0x3c7   :  { %v261_v7 = vadd.f32 %v260_v5, %v259_v4  ;;  %s289_s16 = sshll.u32 %s443_s15, 4  ;;  %v256_v10 = vadd.f32 %v255_v6, %v254_v3  ;;  %s290_s16 = int_to_ptr.vmem [resolvable:$true] %s289_s16 }
 0x3c8   :  { %s409_s17 = scalar_lea.vmem %s290_s16, 32  ;;  %p414_p2 = scmp.lt.s32.totalorder %s290_s16, %s290_s16 }
 0x3c9   :  { %v262_v8 = vrot.slane %v261_v7, 1  ;;  %p410_p1 = scmp.ne.s32.totalorder %s290_s16, %s409_s17  ;;  %p415_p3 = scmp.lt.s32.totalorder %s409_s17, %s409_s17 }
 0x3cb   :  { %v263_v9 = vadd.f32 %v262_v8, %v261_v7  ;;  %p416_p4 = por %p415_p3, %p414_p2 }
 0x3cd   :  { %v278_v11 = vsel %vm179_vm1, %v263_v9, %v256_v10  ;;  %p417_p5 = pnand %p416_p4, %p410_p1 }
 0x3ce   :  { %v280_v12 = vsel %vm66_vm0, %v278_v11, 0.0 }
 0x3cf   :  { %282 = vst [vmem:[#allocation8] sm:$0x3] %v280_v12 }
 0x3d0   :  { %420 = shalt.err (!%p417_p5)
}
 0x3d1   :  { %292 = dma.vmem_to_hbm [thread:$0]  %s290_s16, 32, %s524_s5, [#allocation5]  }
 0x3d2   :  { %433 = dma.done.wait [#allocation5], 32  }
 0x3d3   :  { %434 = vsyncadd [#allocation5], 4294967264 }
 0x3d4   :  { %435 = dma.done.wait [#allocation10], 32  }
 0x3d5   :  { %436 = vsyncadd [#allocation10], 4294967264 }
 0x3d6   :  { %309 = vsyncpa [#allocation4], 1 }
 0x3d7   :  { %310 = vsyncpa [#allocation7], 1 }
 0x3d8   :  { %311 = vsyncpa [#allocation5], 1 }
 0x3d9   :  { %312 = vsyncpa [#allocation10], 1 }

</bundles_post_ra>
